<compile_context>
chip_gen: v5e
topology: v5e:2x2
jax: 0.10.0
libtpu: 0.0.40
codegen_flags: <defaults>
</compile_context>

<pallas_src>
import jax
import jax.numpy as jnp
from jax.experimental import pallas as pl
from jax.experimental.pallas import tpu as pltpu

HIDDEN = 64


def _round_up(n, m):
    return ((n + m - 1) // m) * m


def _has_two_tensorcores():
    """True on v7-class chips (2 TensorCores per chip)."""
    try:
        kind = jax.devices()[0].device_kind.lower()
    except Exception:
        return False
    return ("v7" in kind) or ("tpu7" in kind)


def dqn_kernel(x_ref, w1_ref, w2_ref, w3_ref, b_ref, out_ref):
    """One batch tile of the 3-layer MLP.

    MXU matmuls with f32 accumulation; bias-add / ReLU in f32 on the VPU.
    Intermediate activations are cast back to the weight dtype (bf16) between
    layers -- standard mixed precision (can flip argmax only for near-tied Qs).
    """
    x = x_ref[...]                     # [TB, S]   compute dtype (bf16 default)
    b = b_ref[...]                     # [3, Wb]   f32 packed (b1 | b2 | b3)
    h_dim = w1_ref.shape[1]            # 64
    a_dim = w3_ref.shape[1]            # action_size

    # layer 1
    h = jnp.dot(x, w1_ref[...], preferred_element_type=jnp.float32)
    h = jnp.maximum(h + b[0:1, :h_dim], 0.0)
    # layer 2
    h = jnp.dot(h.astype(w2_ref.dtype), w2_ref[...],
                preferred_element_type=jnp.float32)
    h = jnp.maximum(h + b[1:2, :h_dim], 0.0)
    # layer 3 (no lane padding: store the A-wide result directly)
    h = jnp.dot(h.astype(w3_ref.dtype), w3_ref[...],
                preferred_element_type=jnp.float32)
    out_ref[...] = (h + b[2:3, :a_dim]).astype(out_ref.dtype)


def prepare_params(params, *, compute_dtype=jnp.bfloat16):
    """One-time parameter prep (call once per weight update, reuse for forwards).

    Casts weights to the MXU compute dtype and packs the three biases into a
    single f32 slab so the kernel sees exactly 4 resident operands.
    bf16 is the right choice on v5e, v6e and v7x alike (all MXUs are bf16-native).
    """
    w1, b1 = params["w1"], params["b1"]
    w2, b2 = params["w2"], params["b2"]
    w3, b3 = params["w3"], params["b3"]
    h = w1.shape[1]
    a = w3.shape[1]
    wb = max(h, a)
    b_all = (jnp.zeros((3, wb), jnp.float32)
             .at[0, :h].set(b1.astype(jnp.float32))
             .at[1, :h].set(b2.astype(jnp.float32))
             .at[2, :a].set(b3.astype(jnp.float32)))
    return dict(
        w1=w1.astype(compute_dtype),
        w2=w2.astype(compute_dtype),
        w3=w3.astype(compute_dtype),
        b=b_all,
    )


def dqn_forward(x, prepped, *, block_b=1024, out_dtype=jnp.float32,
                dimension_semantics=None):
    """x: [B, state_size].  prepped: output of prepare_params().

    block_b=1024 keeps per-grid-step pipeline overhead (~0.35us) well amortized;
    the double-buffered VMEM footprint stays tiny on every generation, so no
    vmem_limit_bytes override is needed.
    """
    w1, w2, w3, b_all = prepped["w1"], prepped["w2"], prepped["w3"], prepped["b"]
    compute_dtype = w1.dtype
    B, S = x.shape
    H = w1.shape[1]
    A = w3.shape[1]

    # Batch tiling: bf16 packs 2 rows/sublane -> align tiles to 16 rows (8 for f32).
    row_align = 16 if jnp.dtype(compute_dtype).itemsize < 4 else 8
    TB = min(block_b, _round_up(B, row_align))

    two_tc = _has_two_tensorcores()
    if two_tc and B > row_align and _round_up(B, TB) // TB == 1:
        # Split a single-tile grid in two so both v7x TensorCores get work.
        TB = _round_up(-(-B // 2), row_align)

    B_pad = _round_up(B, TB)
    grid_steps = B_pad // TB

    if dimension_semantics is None:
        if two_tc and grid_steps >= 2:
            dimension_semantics = (pltpu.CORE_PARALLEL,)   # real 2-TC split on v7x
        else:
            dimension_semantics = ("parallel",)

    # Per-call input prep: cast (and zero-pad ragged batch) only.
    x_c = x.astype(compute_dtype)
    if B_pad != B:
        x_c = jnp.zeros((B_pad, S), compute_dtype).at[:B].set(x_c)

    out = pl.pallas_call(
        dqn_kernel,
        out_shape=jax.ShapeDtypeStruct((B_pad, A), out_dtype),
        grid=(grid_steps,),
        in_specs=[
            pl.BlockSpec((TB, S), lambda i: (i, 0)),            # x: streamed
            pl.BlockSpec((S, H), lambda i: (0, 0)),              # weights: constant
            pl.BlockSpec((H, H), lambda i: (0, 0)),              #   index -> VMEM
            pl.BlockSpec((H, A), lambda i: (0, 0)),              #   resident
            pl.BlockSpec((3, b_all.shape[1]), lambda i: (0, 0)),  # packed biases
        ],
        out_specs=pl.BlockSpec((TB, A), lambda i: (i, 0)),
        compiler_params=pltpu.CompilerParams(
            dimension_semantics=dimension_semantics,
        ),
    )(x_c, w1, w2, w3, b_all)
    return out[:B] if B_pad != B else out


def init_params(key, state_size, action_size, hidden=HIDDEN):
    # Deterministic init mimicking nn.Linear default (uniform +/- 1/sqrt(fan_in)).
    ks = jax.random.split(key, 6)

    def linear(kw, kb, fan_in, fan_out):
        bound = float(fan_in) ** -0.5
        w = jax.random.uniform(kw, (fan_in, fan_out), jnp.float32, -bound, bound)
        b = jax.random.uniform(kb, (fan_out,), jnp.float32, -bound, bound)
        return w, b

    w1, b1 = linear(ks[0], ks[1], state_size, hidden)
    w2, b2 = linear(ks[2], ks[3], hidden, hidden)
    w3, b3 = linear(ks[4], ks[5], hidden, action_size)
    return dict(w1=w1, b1=b1, w2=w2, b2=b2, w3=w3, b3=b3)


if __name__ == "__main__":
    key = jax.random.PRNGKey(0)
    k_x, k_p = jax.random.split(key)

    B, STATE, ACTION = 8, 16, 4
    x = jax.random.normal(k_x, (B, STATE), jnp.float32)
    params = init_params(k_p, STATE, ACTION)

    prepped = prepare_params(params)          # one-time prep (cast + bias pack)
    out = dqn_forward(x, prepped)
    jax.block_until_ready(out)

    # Reference in plain f32 JAX (same math as the torch forward).
    h = jnp.maximum(x @ params["w1"] + params["b1"], 0.0)
    h = jnp.maximum(h @ params["w2"] + params["b2"], 0.0)
    ref = h @ params["w3"] + params["b3"]

    assert out.shape == (B, ACTION)
    # bf16 matmul inputs + f32 accumulation: loose-ish tolerance vs. f32 reference.
    assert jnp.allclose(out, ref, atol=5e-2, rtol=5e-2), "mismatch vs reference"

    print("KERNEL_OK")
</pallas_src>

<mosaic_0001>
module attributes {stable_mosaic.version = 11 : i64} {
  func.func @dqn_kernel(%arg0: i32, %arg1: memref<16x16xbf16, #tpu.memory_space<vmem>>, %arg2: memref<16x64xbf16, #tpu.memory_space<vmem>>, %arg3: memref<64x64xbf16, #tpu.memory_space<vmem>>, %arg4: memref<64x4xbf16, #tpu.memory_space<vmem>>, %arg5: memref<3x64xf32, #tpu.memory_space<vmem>>, %arg6: memref<16x4xf32, #tpu.memory_space<vmem>>) attributes {dimension_semantics = [#tpu.dimension_semantics<parallel>], iteration_bounds = array<i64: 1>, scalar_prefetch = 0 : i64, scratch_operands = 0 : i64, tpu.core_type = #tpu.core_type<tc>, window_params = [{transform_indices = @transform_0, window_bounds = array<i64: 16, 16>}, {pipeline_mode = #tpu.pipeline_mode<synchronous>, transform_indices = @transform_1, window_bounds = array<i64: 16, 64>}, {pipeline_mode = #tpu.pipeline_mode<synchronous>, transform_indices = @transform_2, window_bounds = array<i64: 64, 64>}, {pipeline_mode = #tpu.pipeline_mode<synchronous>, transform_indices = @transform_3, window_bounds = array<i64: 64, 4>}, {pipeline_mode = #tpu.pipeline_mode<synchronous>, transform_indices = @transform_4, window_bounds = array<i64: 3, 64>}, {transform_indices = @transform_5, window_bounds = array<i64: 16, 4>}]} {
    %c0 = arith.constant 0 : index
    %c0_0 = arith.constant 0 : index
    %0 = vector.load %arg1[%c0, %c0_0] : memref<16x16xbf16, #tpu.memory_space<vmem>>, vector<16x16xbf16>
    %c0_1 = arith.constant 0 : index
    %c0_2 = arith.constant 0 : index
    %1 = vector.load %arg5[%c0_1, %c0_2] : memref<3x64xf32, #tpu.memory_space<vmem>>, vector<3x64xf32>
    %c0_3 = arith.constant 0 : index
    %c0_4 = arith.constant 0 : index
    %2 = vector.load %arg2[%c0_3, %c0_4] : memref<16x64xbf16, #tpu.memory_space<vmem>>, vector<16x64xbf16>
    %cst = arith.constant dense<0.000000e+00> : vector<16x64xf32>
    %3 = tpu.matmul %0, %2, %cst {dimension_numbers = #tpu.dot_dimension_numbers<[1], [0], [0], [1], [0, 0, 1, 1], [], []>} : vector<16x16xbf16>, vector<16x64xbf16>, vector<16x64xf32> -> vector<16x64xf32>
    %4 = vector.extract_strided_slice %1 {offsets = [0, 0], sizes = [1, 64], strides = [1, 1]} : vector<3x64xf32> to vector<1x64xf32>
    %5 = vector.broadcast %4 : vector<1x64xf32> to vector<16x64xf32>
    %6 = arith.addf %3, %5 : vector<16x64xf32>
    %cst_5 = arith.constant 0.000000e+00 : f32
    %7 = vector.broadcast %cst_5 : f32 to vector<16x64xf32>
    %8 = arith.maximumf %6, %7 : vector<16x64xf32>
    %9 = arith.truncf %8 : vector<16x64xf32> to vector<16x64xbf16>
    %c0_6 = arith.constant 0 : index
    %c0_7 = arith.constant 0 : index
    %10 = vector.load %arg3[%c0_6, %c0_7] : memref<64x64xbf16, #tpu.memory_space<vmem>>, vector<64x64xbf16>
    %cst_8 = arith.constant dense<0.000000e+00> : vector<16x64xf32>
    %11 = tpu.matmul %9, %10, %cst_8 {dimension_numbers = #tpu.dot_dimension_numbers<[1], [0], [0], [1], [0, 0, 1, 1], [], []>} : vector<16x64xbf16>, vector<64x64xbf16>, vector<16x64xf32> -> vector<16x64xf32>
    %12 = vector.extract_strided_slice %1 {offsets = [1, 0], sizes = [1, 64], strides = [1, 1]} : vector<3x64xf32> to vector<1x64xf32>
    %13 = vector.broadcast %12 : vector<1x64xf32> to vector<16x64xf32>
    %14 = arith.addf %11, %13 : vector<16x64xf32>
    %cst_9 = arith.constant 0.000000e+00 : f32
    %15 = vector.broadcast %cst_9 : f32 to vector<16x64xf32>
    %16 = arith.maximumf %14, %15 : vector<16x64xf32>
    %17 = arith.truncf %16 : vector<16x64xf32> to vector<16x64xbf16>
    %c0_10 = arith.constant 0 : index
    %c0_11 = arith.constant 0 : index
    %18 = vector.load %arg4[%c0_10, %c0_11] : memref<64x4xbf16, #tpu.memory_space<vmem>>, vector<64x4xbf16>
    %cst_12 = arith.constant dense<0.000000e+00> : vector<16x4xf32>
    %19 = tpu.matmul %17, %18, %cst_12 {dimension_numbers = #tpu.dot_dimension_numbers<[1], [0], [0], [1], [0, 0, 1, 1], [], []>} : vector<16x64xbf16>, vector<64x4xbf16>, vector<16x4xf32> -> vector<16x4xf32>
    %20 = vector.extract_strided_slice %1 {offsets = [2, 0], sizes = [1, 4], strides = [1, 1]} : vector<3x64xf32> to vector<1x4xf32>
    %21 = vector.broadcast %20 : vector<1x4xf32> to vector<16x4xf32>
    %22 = arith.addf %19, %21 : vector<16x4xf32>
    %c0_13 = arith.constant 0 : index
    %c0_14 = arith.constant 0 : index
    %23 = vector.load %arg6[%c0_13, %c0_14] : memref<16x4xf32, #tpu.memory_space<vmem>>, vector<16x4xf32>
    tpu.vector_store %arg6[%c0_13, %c0_14], %22 {strides = array<i32>} : memref<16x4xf32, #tpu.memory_space<vmem>>, vector<16x4xf32>,
    return
  }
  func.func @transform_0(%arg0: i32) -> (i32, i32) {
    %c0_i32 = arith.constant 0 : i32
    %c0_i32_0 = arith.constant 0 : i32
    return %arg0, %c0_i32 : i32, i32
  }
  func.func @transform_1(%arg0: i32) -> (i32, i32) {
    %c0_i32 = arith.constant 0 : i32
    %c0_i32_0 = arith.constant 0 : i32
    %c0_i32_1 = arith.constant 0 : i32
    return %c0_i32, %c0_i32_0 : i32, i32
  }
  func.func @transform_2(%arg0: i32) -> (i32, i32) {
    %c0_i32 = arith.constant 0 : i32
    %c0_i32_0 = arith.constant 0 : i32
    %c0_i32_1 = arith.constant 0 : i32
    return %c0_i32, %c0_i32_0 : i32, i32
  }
  func.func @transform_3(%arg0: i32) -> (i32, i32) {
    %c0_i32 = arith.constant 0 : i32
    %c0_i32_0 = arith.constant 0 : i32
    %c0_i32_1 = arith.constant 0 : i32
    return %c0_i32, %c0_i32_0 : i32, i32
  }
  func.func @transform_4(%arg0: i32) -> (i32, i32) {
    %c0_i32 = arith.constant 0 : i32
    %c0_i32_0 = arith.constant 0 : i32
    %c0_i32_1 = arith.constant 0 : i32
    return %c0_i32, %c0_i32_0 : i32, i32
  }
  func.func @transform_5(%arg0: i32) -> (i32, i32) {
    %c0_i32 = arith.constant 0 : i32
    %c0_i32_0 = arith.constant 0 : i32
    return %arg0, %c0_i32 : i32, i32
  }
}

</mosaic_0001>

<bundles_post_ra>
// kernel: tpu_custom_call.1
= control target key start
LH: loop header
LB: loop body
LE: loop exit
PB: predicated region body
PF: predicated region fallthrough
CT: control target
= control target key end

     0   :  { %10 = vsyncpa [#allocation3], 0  ;;  %s427_s0 = inlined_call_operand.hbm [shape: bf16[16,16], index: 0, kind: input, shape index: {}]   ;;  %s428_s1 = inlined_call_operand.hbm [shape: bf16[16,64], index: 1, kind: input, shape index: {}]   ;;  %s429_s2 = inlined_call_operand.vmem [shape: bf16[64,64], index: 2, kind: input, shape index: {}]   ;;  %s430_s3 = inlined_call_operand.vmem [shape: bf16[64,4], index: 3, kind: input, shape index: {}]   ;;  %s431_s4 = inlined_call_operand.hbm [shape: f32[3,64], index: 4, kind: input, shape index: {}]   ;;  %s432_s5 = inlined_call_operand.vmem [shape: f32[16,4], index: 5, kind: output, shape index: {}]  }
   0x1   :  { %11 = vsyncpa [#allocation5], 0  ;;  %s29_s20 = sshll.u32 %s428_s1, 4  ;;  %s351_s21 = smov [#allocation4]   ;;  %s30_s20 = int_to_ptr.hbm [resolvable:$true] %s29_s20 }
   0x2   :  { %s31_s22 = sshll.u32 %s351_s21, 4  ;;  %s16_s25 = sshll.u32 %s427_s0, 4  ;;  %s32_s22 = int_to_ptr.vmem [resolvable:$true] %s31_s22  ;;  %s17_s25 = int_to_ptr.hbm [resolvable:$true] %s16_s25 }
   0x3   :  { %s352_s26 = smov 64   ;;  %s353_s27 = smov 4  }
   0x4   :  { %37 = dma.hbm_to_vmem [thread:$0]  %s30_s20, 128, %s32_s22, [#allocation5], %s352_s26, %s352_s26, %s353_s27  }
   0x5   :  { %s354_s28 = smov [#allocation2]   ;;  %s47_s7 = sshll.u32 %s431_s4, 4  ;;  %s48_s7 = int_to_ptr.hbm [resolvable:$true] %s47_s7 }
   0x6   :  { %s18_s29 = sshll.u32 %s354_s28, 4  ;;  %s355_s1 = smov [#allocation6]   ;;  %s19_s29 = int_to_ptr.vmem [resolvable:$true] %s18_s29 }
   0x7   :  { %24 = dma.hbm_to_vmem [thread:$0]  %s17_s25, 128, %s19_s29, [#allocation3], %s352_s26, %s352_s26, %s353_s27  }
   0x8   :  { %s49_s8 = sshll.u32 %s355_s1, 4  ;;  %s50_s8 = int_to_ptr.vmem [resolvable:$true] %s49_s8 }
   0x9   :  { %52 = dma.hbm_to_vmem [thread:$0]  %s48_s7, 64, %s50_s8, [#allocation5]  }
   0xa   :  { %347 = dma.done.wait [#allocation3], 128  }
   0xb   :  { %348 = vsyncadd [#allocation3], 4294967168 }
   0xc   :  { %349 = dma.done.wait [#allocation5], 192  }
   0xd   :  { %350 = vsyncadd [#allocation5], 4294967104  ;;  %v261_v0 = vld [vmem:[#allocation4] sm:$0xff]  ;;  %v260_v1 = vld [vmem:[#allocation2] sm:$0xff]  ;;  %vm83_vm0 = vcmask 130048   ;;  %vm137_vm1 = vcmask 523264  }
   0xe   :  { %94 = vmatpush.bf16.msra.mxu0 %v261_v0  ;;  %v265_v2 = vld [vmem:[%s429_s2 + $0x18] sm:$0xff]  ;;  %v264_v3 = vld [vmem:[%s429_s2 + $0x10] sm:$0xff]  ;;  %v263_v4 = vld [vmem:[%s429_s2 + $0x8] sm:$0xff]  ;;  %vm208_vm2 = vcmask 31744  }
   0xf   :  { %145 = vmatpush.bf16.msra.mxu1 %v265_v2  ;;  %v262_v5 = vld [vmem:[%s429_s2] sm:$0xff]  ;;  %v68_v6 = vld [vmem:[#allocation6] sm:$0x7]  ;;  %v269_v15 = vld [vmem:[%s430_s3 + $0x18] sm:$0xff] }
  0x10   :  { %v71_v8 = vperm.slane %v68_v6, 0  ;;  %198 = vmatpush.bf16.msra.mxu2 %v269_v15  ;;  %v268_v16 = vld [vmem:[%s430_s3 + $0x10] sm:$0xff]  ;;  %v267_v17 = vld [vmem:[%s430_s3 + $0x8] sm:$0xff]  ;;  %v266_v18 = vld [vmem:[%s430_s3] sm:$0xff]  ;;  %v112_v20 = vperm.slane %v68_v6, 1  ;;  %v166_v27 = vperm.slane %v68_v6, 2 }
  0x11   :  { %225 = vmatmul.msk.bf16.vlgmr.msra.gmra.mxu0 %vm83_vm0, %v260_v1 }
  0x13   :  { %146 = vmatpush.bf16.msra.mxu1 %v264_v3 }
  0x14   :  { %199 = vmatpush.bf16.msra.mxu2 %v268_v16 }
  0x17   :  { %147 = vmatpush.bf16.msra.mxu1 %v263_v4 }
  0x18   :  { %200 = vmatpush.bf16.msra.mxu2 %v267_v17 }
  0x1b   :  { %148 = vmatpush.bf16.msra.mxu1 %v262_v5 }
  0x1c   :  { %201 = vmatpush.bf16.msra.mxu2 %v266_v18 }
  0x8e   :  { %v96_v7 = vpop.f32.mrf.mxu0 }
  0x8f   :  { %v97_v9 = vadd.f32 %v96_v7, %v71_v8 }
  0x91   :  { %v101_v12 = vmax.f32 %v97_v9, 0.0 }
  0x96   :  { %v98_v10 = vpop.f32.mrf.mxu0 }
  0x97   :  { %v99_v11 = vadd.f32 %v98_v10, %v71_v8 }
  0x99   :  { %v102_v13 = vmax.f32 %v99_v11, 0.0 }
  0x9b   :  { %v103_v14 = vpack.c.bf16 %v102_v13, %v101_v12 }
  0x9d   :  { %242 = vmatmul.msk.bf16.vlgmr.msra.gmra.mxu1 %vm137_vm1, %v103_v14 }
 0x11a   :  { %v150_v19 = vpop.f32.mrf.mxu1 }
 0x11b   :  { %v151_v21 = vadd.f32 %v150_v19, %v112_v20 }
 0x11d   :  { %v155_v24 = vmax.f32 %v151_v21, 0.0 }
 0x122   :  { %v152_v22 = vpop.f32.mrf.mxu1 }
 0x123   :  { %v153_v23 = vadd.f32 %v152_v22, %v112_v20 }
 0x125   :  { %v156_v25 = vmax.f32 %v153_v23, 0.0 }
 0x127   :  { %v157_v26 = vpack.c.bf16 %v156_v25, %v155_v24 }
 0x129   :  { %259 = vmatmul.msk.bf16.vlgmr.msra.gmra.mxu2 %vm137_vm1, %v157_v26 }
 0x1ac   :  { %v203_v28 = vpop.f32.mrf.mxu2 }
 0x1ad   :  { %v204_v29 = vadd.f32 %v203_v28, %v166_v27 }
 0x1af   :  { %209 = vst.msk [vmem:[%s432_s5] sm:$0xff] %vm208_vm2, %v204_v29 }
 0x1b4   :  { %v205_v30 = vpop.f32.mrf.mxu2 }
 0x1b5   :  { %v206_v31 = vadd.f32 %v205_v30, %v166_v27 }
 0x1b7   :  { %210 = vst.msk [vmem:[%s432_s5 + $0x8] sm:$0xff] %vm208_vm2, %v206_v31 }
 0x1b8   :  { %215 = vsyncpa [#allocation3], 1 }
 0x1b9   :  { %216 = vsyncpa [#allocation5], 1 }

</bundles_post_ra>
